<compile_context>
chip_gen: v6e
topology: v6e:2x2x1
jax: 0.10.0
libtpu: 0.0.40
codegen_flags: <defaults>
</compile_context>

<pallas_src>
import functools

import jax
import jax.numpy as jnp
from jax.experimental import pallas as pl
from jax.experimental.pallas import tpu as pltpu

_LANE = 128
_VMEM_WS_BUDGET = 32 * 1024 * 1024      # target working-set bytes (all gens)
_VMEM_LIMIT_CAP = 64 * 1024 * 1024      # never exceed v7x physical VMEM
_STEP_OVERHEAD_S = 0.35e-6              # ~fixed per-grid-step overhead
_HBM_BW = 1.0e12                        # representative BW (relative use only)


def _round_up(x: int, m: int) -> int:
    return ((x + m - 1) // m) * m


# ---------------------------------------------------------------------------
# Kernels
# ---------------------------------------------------------------------------

def _bmm_single_kernel(a_ref, f_ref, o_ref):
    """Full-K: one MXU pass per (batch, row-tile); no accumulator needed."""
    o_ref[...] = jnp.dot(
        a_ref[...], f_ref[...], preferred_element_type=jnp.float32
    ).astype(o_ref.dtype)


def _bmm_tiled_kernel(a_ref, f_ref, o_ref, *, tk, resident_features):
    """K-tiled, f32 output: accumulate directly into o_ref (no scratch)."""
    k = pl.program_id(2)
    if resident_features:
        start = pl.multiple_of(k * tk, tk)
        f = f_ref[pl.ds(start, tk), :]
    else:
        f = f_ref[...]
    part = jnp.dot(a_ref[...], f, preferred_element_type=jnp.float32)

    @pl.when(k == 0)
    def _init():
        o_ref[...] = part

    @pl.when(k != 0)
    def _accum():
        o_ref[...] += part


def _bmm_tiled_scratch_kernel(a_ref, f_ref, o_ref, acc_ref, *, tk,
                              resident_features):
    """K-tiled, non-f32 output: f32 scratch accumulator + final cast."""
    k = pl.program_id(2)
    if resident_features:
        start = pl.multiple_of(k * tk, tk)
        f = f_ref[pl.ds(start, tk), :]
    else:
        f = f_ref[...]
    part = jnp.dot(a_ref[...], f, preferred_element_type=jnp.float32)

    @pl.when(k == 0)
    def _init():
        acc_ref[...] = part

    @pl.when(k != 0)
    def _accum():
        acc_ref[...] += part

    @pl.when(k == pl.num_programs(2) - 1)
    def _finalize():
        o_ref[...] = acc_ref[...].astype(o_ref.dtype)


# ---------------------------------------------------------------------------
# Host-side planning
# ---------------------------------------------------------------------------

def _plan(N, Dp, in_size, out_size, sub, acc_in_out):
    """Pick tiling. Returns dict(kind, tm, tk, np_m, np_k, resident, ws)."""
    nm_sub = _round_up(N, sub)
    tm_cands = sorted(
        {t for t in (1024, 512, 256, 128, 64, 32, 16, 8) if t % sub == 0}
        | ({nm_sub} if nm_sub <= 1024 else set())
    )

    def model_cost(np_m, np_k, tm, tk, resident):
        steps = (np_m // tm) * (np_k // tk)
        a_bytes = np_m * np_k * in_size
        f_reads = 1 if resident else (np_m // tm)
        f_bytes = f_reads * np_k * Dp * in_size
        o_bytes = np_m * Dp * out_size
        return steps * _STEP_OVERHEAD_S + (a_bytes + f_bytes + o_bytes) / _HBM_BW

    best = None

    # Plan A: whole contraction dim per step (no K-pad of A, resident features).
    for tm in tm_cands:
        np_m = _round_up(N, tm)
        ws = (2 * tm * N * in_size          # A tile, double buffered
              + 2 * N * Dp * in_size        # resident features, double buffered
              + 2 * tm * Dp * out_size)     # output tile, double buffered
        if ws > _VMEM_WS_BUDGET:
            continue
        c = model_cost(np_m, N, tm, N, True)
        if best is None or c < best["cost"]:
            best = dict(kind="single", tm=tm, tk=N, np_m=np_m, np_k=N,
                        resident=True, ws=ws, cost=c)

    # Plan B: K tiled along a third ("arbitrary") grid axis.
    np_k = _round_up(N, _LANE)
    scratch_per_row = 0 if acc_in_out else 4 * Dp
    for tm in tm_cands:
        np_m = _round_up(N, tm)
        for tk in (1024, 512, 256, 128):
            if np_k % tk:
                continue
            for resident in (True, False):
                f_vmem = (2 * np_k * Dp * in_size) if resident \
                    else (2 * tk * Dp * in_size)
                ws = (2 * tm * tk * in_size + f_vmem
                      + 2 * tm * Dp * out_size + tm * scratch_per_row)
                if ws > _VMEM_WS_BUDGET:
                    continue
                c = model_cost(np_m, np_k, tm, tk, resident)
                if best is None or c < best["cost"]:
                    best = dict(kind="tiled", tm=tm, tk=tk, np_m=np_m,
                                np_k=np_k, resident=resident, ws=ws, cost=c)

    if best is None:
        # TODO(synk): add an output-column (D) tile for extremely large D where
        # even the minimal (tm, Dp) working set exceeds the VMEM budget.
        tm, tk = sub, 128
        ws = (2 * tm * tk * in_size + 2 * tk * Dp * in_size
              + 2 * tm * Dp * out_size + tm * scratch_per_row)
        best = dict(kind="tiled", tm=tm, tk=tk, np_m=_round_up(N, tm),
                    np_k=np_k, resident=False, ws=ws, cost=0.0)
    return best


# ---------------------------------------------------------------------------
# Wrapper
# ---------------------------------------------------------------------------

@functools.partial(jax.jit, static_argnames=("compute_dtype",))
def mean_aggregator(features, A, *, compute_dtype=None):
    """Pallas TPU equivalent of torch.bmm(A, features)."""
    B, N, D = features.shape
    assert A.shape == (B, N, N), f"A must be (B, N, N), got {A.shape}"

    out_dtype = features.dtype

    # Optional reduced-precision inputs (cast in the wrapper so HBM traffic of
    # A is halved too); MXU accumulation stays f32 regardless.
    if compute_dtype is not None:
        A = A.astype(compute_dtype)
        features = features.astype(compute_dtype)
    in_dtype = jnp.result_type(A.dtype, features.dtype)
    A = A.astype(in_dtype)
    features = features.astype(in_dtype)

    in_size = jnp.dtype(in_dtype).itemsize
    out_size = jnp.dtype(out_dtype).itemsize
    sub = max(8, 32 // in_size)           # sublane multiple: 8 f32, 16 bf16
    Dp = _round_up(D, _LANE)              # lane-dense stores
    acc_in_out = jnp.dtype(out_dtype) == jnp.dtype(jnp.float32)

    p = _plan(N, Dp, in_size, out_size, sub, acc_in_out)
    tm, tk = p["tm"], p["tk"]
    Np_m, Np_k = p["np_m"], p["np_k"]
    resident = p["resident"]

    # Pad only what the chosen plan actually needs (A untouched when aligned).
    pad_m, pad_k, pad_d = Np_m - N, Np_k - N, Dp - D
    if pad_m or pad_k:
        A = jnp.pad(A, ((0, 0), (0, pad_m), (0, pad_k)))
    if pad_k or pad_d:
        features = jnp.pad(features, ((0, 0), (0, pad_k), (0, pad_d)))

    scratch_shapes = []
    if p["kind"] == "single":
        grid = (B, Np_m // tm)
        in_specs = [
            pl.BlockSpec((pl.Squeezed(), tm, Np_k), lambda b, i: (b, i, 0)),
            pl.BlockSpec((pl.Squeezed(), Np_k, Dp), lambda b, i: (b, 0, 0)),
        ]
        out_specs = pl.BlockSpec((pl.Squeezed(), tm, Dp), lambda b, i: (b, i, 0))
        kernel = _bmm_single_kernel
        dim_sem = ("parallel", "parallel")
        f_reads = 1
    else:
        grid = (B, Np_m // tm, Np_k // tk)
        if resident:
            f_spec = pl.BlockSpec((pl.Squeezed(), Np_k, Dp),
                                  lambda b, i, k: (b, 0, 0))
        else:
            f_spec = pl.BlockSpec((pl.Squeezed(), tk, Dp),
                                  lambda b, i, k: (b, k, 0))
        in_specs = [
            pl.BlockSpec((pl.Squeezed(), tm, tk), lambda b, i, k: (b, i, k)),
            f_spec,
        ]
        out_specs = pl.BlockSpec((pl.Squeezed(), tm, Dp),
                                 lambda b, i, k: (b, i, 0))
        dim_sem = ("parallel", "parallel", "arbitrary")
        f_reads = 1 if resident else (Np_m // tm)
        if acc_in_out:
            kernel = functools.partial(_bmm_tiled_kernel, tk=tk,
                                       resident_features=resident)
        else:
            kernel = functools.partial(_bmm_tiled_scratch_kernel, tk=tk,
                                       resident_features=resident)
            scratch_shapes = [pltpu.VMEM((tm, Dp), jnp.float32)]

    # Truthful traffic estimate: A once, features f_reads times, out once.
    cost = pl.CostEstimate(
        flops=2 * B * Np_m * Np_k * Dp,
        transcendentals=0,
        bytes_accessed=(B * Np_m * Np_k * in_size
                        + B * f_reads * Np_k * Dp * in_size
                        + B * Np_m * Dp * out_size),
    )

    vmem_limit = int(min(_VMEM_LIMIT_CAP,
                         max(32 * 1024 * 1024, 2 * p["ws"] + (4 << 20))))

    out_padded = pl.pallas_call(
        kernel,
        out_shape=jax.ShapeDtypeStruct((B, Np_m, Dp), out_dtype),
        grid=grid,
        in_specs=in_specs,
        out_specs=out_specs,
        scratch_shapes=scratch_shapes,
        compiler_params=pltpu.CompilerParams(
            dimension_semantics=dim_sem,
            vmem_limit_bytes=vmem_limit,
        ),
        cost_estimate=cost,
    )(A, features)

    if pad_m or pad_d:
        return out_padded[:, :N, :D]
    return out_padded


if __name__ == "__main__":
    key = jax.random.PRNGKey(0)
    k1, k2 = jax.random.split(key)

    B, N, D = 2, 16, 32  # small demo shapes consistent with the module

    features = jax.random.normal(k1, (B, N, D), dtype=jnp.float32)
    # Row-normalized adjacency (typical for a mean aggregator); kernel is a
    # plain bmm so any A works.
    A_raw = jax.random.uniform(k2, (B, N, N), dtype=jnp.float32)
    A = A_raw / jnp.sum(A_raw, axis=-1, keepdims=True)

    ref = jnp.einsum("bij,bjd->bid", A, features)

    # f32 path (default): exact semantics of torch.bmm.
    out = mean_aggregator(features, A)
    jax.block_until_ready(out)
    assert out.shape == (B, N, D)
    assert jnp.allclose(out, ref, atol=1e-5, rtol=1e-5), "f32 mismatch vs bmm"

    # Optional bf16-input path (halves HBM traffic of A; f32 accumulation).
    out_bf16 = mean_aggregator(features, A, compute_dtype=jnp.bfloat16)
    jax.block_until_ready(out_bf16)
    assert out_bf16.shape == (B, N, D)
    assert jnp.allclose(out_bf16, ref, atol=5e-2, rtol=5e-2), "bf16 mismatch"

    print("KERNEL_OK")
</pallas_src>

<mosaic_0001>
module attributes {stable_mosaic.version = 11 : i64} {
  func.func @_bmm_single_kernel(%arg0: i32, %arg1: i32, %arg2: memref<1x16x16xf32, #tpu.memory_space<vmem>>, %arg3: memref<1x16x128xf32, #tpu.memory_space<vmem>>, %arg4: memref<1x16x128xf32, #tpu.memory_space<vmem>>) attributes {dimension_semantics = [#tpu.dimension_semantics<parallel>, #tpu.dimension_semantics<parallel>], iteration_bounds = array<i64: 2, 1>, scalar_prefetch = 0 : i64, scratch_operands = 0 : i64, tpu.core_type = #tpu.core_type<tc>, window_params = [{transform_indices = @transform_0, window_bounds = array<i64: 1, 16, 16>}, {transform_indices = @transform_1, window_bounds = array<i64: 1, 16, 128>}, {transform_indices = @transform_2, window_bounds = array<i64: 1, 16, 128>}]} {
    %c0 = arith.constant 0 : index
    %c0_0 = arith.constant 0 : index
    %c0_1 = arith.constant 0 : index
    %0 = vector.load %arg2[%c0, %c0_0, %c0_1] : memref<1x16x16xf32, #tpu.memory_space<vmem>>, vector<1x16x16xf32>
    %1 = vector.shape_cast %0 : vector<1x16x16xf32> to vector<16x16xf32>
    %c0_2 = arith.constant 0 : index
    %c0_3 = arith.constant 0 : index
    %c0_4 = arith.constant 0 : index
    %2 = vector.load %arg3[%c0_2, %c0_3, %c0_4] : memref<1x16x128xf32, #tpu.memory_space<vmem>>, vector<1x16x128xf32>
    %3 = vector.shape_cast %2 : vector<1x16x128xf32> to vector<16x128xf32>
    %cst = arith.constant dense<0.000000e+00> : vector<16x128xf32>
    %4 = tpu.matmul %1, %3, %cst {dimension_numbers = #tpu.dot_dimension_numbers<[1], [0], [0], [1], [0, 0, 1, 1], [], []>} : vector<16x16xf32>, vector<16x128xf32>, vector<16x128xf32> -> vector<16x128xf32>
    %c0_5 = arith.constant 0 : index
    %c0_6 = arith.constant 0 : index
    %c0_7 = arith.constant 0 : index
    %5 = vector.load %arg4[%c0_5, %c0_6, %c0_7] : memref<1x16x128xf32, #tpu.memory_space<vmem>>, vector<1x16x128xf32>
    %6 = vector.shape_cast %5 : vector<1x16x128xf32> to vector<16x128xf32>
    %7 = vector.shape_cast %4 : vector<16x128xf32> to vector<1x16x128xf32>
    tpu.vector_store %arg4[%c0_5, %c0_6, %c0_7], %7 {strides = array<i32>} : memref<1x16x128xf32, #tpu.memory_space<vmem>>, vector<1x16x128xf32>,
    return
  }
  func.func @transform_0(%arg0: i32, %arg1: i32) -> (i32, i32, i32) {
    %c0_i32 = arith.constant 0 : i32
    %c0_i32_0 = arith.constant 0 : i32
    return %arg0, %arg1, %c0_i32 : i32, i32, i32
  }
  func.func @transform_1(%arg0: i32, %arg1: i32) -> (i32, i32, i32) {
    %c0_i32 = arith.constant 0 : i32
    %c0_i32_0 = arith.constant 0 : i32
    %c0_i32_1 = arith.constant 0 : i32
    return %arg0, %c0_i32, %c0_i32_0 : i32, i32, i32
  }
  func.func @transform_2(%arg0: i32, %arg1: i32) -> (i32, i32, i32) {
    %c0_i32 = arith.constant 0 : i32
    %c0_i32_0 = arith.constant 0 : i32
    return %arg0, %arg1, %c0_i32 : i32, i32, i32
  }
}

</mosaic_0001>

<bundles_post_ra>
// kernel: mean_aggregator.1
= control target key start
LH: loop header
LB: loop body
LE: loop exit
PB: predicated region body
PF: predicated region fallthrough
CT: control target
= control target key end

     0   :  { %7 = vsyncpa [#allocation3], 0  ;;  %s689_s0 = inlined_call_operand.vmem [shape: f32[2,16,16], index: 0, kind: input, shape index: {}]   ;;  %s690_s1 = inlined_call_operand.vmem [shape: f32[2,16,128], index: 1, kind: input, shape index: {}]   ;;  %s691_s2 = inlined_call_operand.hbm [shape: f32[2,16,128], index: 2, kind: output, shape index: {}]  }
   0x1   :  { %9 = vsyncpa [#allocation3 + $0x1], 0  ;;  %s572_s9 = smov 0   ;;  %s574_s10 = smov 0  }
   0x2   :  { %s576_s11 = smov 0   ;;  %s578_s12 = smov 0  }
   0x3   :  { %s580_s13 = smov 0   ;;  %s582_s14 = smov 0  }
   0x4 LB: > { %s388_s15 = sadd.s32 4294967295, %s552_s14   ;;  %s389_s16 = sadd.s32 4294967294, %s552_s14   ;;  %s552_s14 = sphi %s582_s14, %s15_s14   ;;  %s548_s13 = sphi %s580_s13, %s698_s13   ;;  %s544_s12 = sphi %s578_s12, %s697_s12   ;;  %s540_s11 = sphi %s576_s11, %s696_s11   ;;  %s536_s10 = sphi %s574_s10, %s695_s10   ;;  %s532_s9 = sphi %s572_s9, %s694_s9  }
   0x5   : > { %s27_s17 = sadd.s32 1, %s548_s13  ;;  %s90_s18 = sadd.s32 1, %s540_s11 }
   0x6   : > { %p29_p0 = scmp.ge.s32.totalorder %s27_s17, 2  ;;  %p100_p1 = scmp.ne.s32.totalorder %s540_s11, %s536_s10 }
   0x7   : > { %p101_p2 = scmp.eq.s32.totalorder %s388_s15, 1  ;;  %p106_p3 = scmp.ne.s32.totalorder %s536_s10, %s532_s9 }
   0x8   : > { %s700_s17 = smov (%p29_p0, %s27_s17), 0  ;;  %p107_p5 = scmp.eq.s32.totalorder %s389_s16, 1 }
   0x9   : > { %p612_p4 = por %p101_p2, %p100_p1  ;;  %s85_s20 = ssub.s32 %s548_s13, %s700_s17 }
   0xa   : > { %p392_p6 = scmp.ge.s32.totalorder %s552_s14, 1  ;;  %p88_p7 = scmp.eq.s32.totalorder %s85_s20, 0 }
   0xb   : > { %p619_p8 = por %p107_p5, %p106_p3  ;;  %p146_p9 = scmp.lt.s32.totalorder %s552_s14, 3 }
   0xc   : > { %s625_s22 = scalar_select %p88_p7, %s540_s11, %s90_s18  }
   0xd   : > { %p147_p10 = pnand %p392_p6, %p146_p9 }
   0xe   : > { %p178_p11 = scmp.lt.s32.totalorder (!%p147_p10), %s544_s12, 1  ;;  %s174_s3 = sand.u32 (!%p147_p10), 1, %s536_s10  }
   0xf   : > { %150 = sbr.rel (%p147_p10) target bundleno = 238 (0xee), region = 28  ;;  %s393_s4 = sshll.u32 (!%p147_p10), %s174_s3, 4 }
  0x10   : > { %s176_s5 = scalar_lea.vmem (!%p147_p10), [#allocation2], %s393_s4  ;;  %s407_s7 = sshll.u32 (!%p147_p10), %s544_s12, 8 }
  0x11   : > { %s297_s6 = sshll.u32 (!%p147_p10), %s176_s5, 4  ;;  %s642_s16 = scalar_lea.hbm (!%p147_p10), %s691_s2, %s407_s7  ;;  %s637_s6 = int_to_ptr.vmem [resolvable:$true] %s297_s6 }
  0x12   : > { %s644_s18 = scalar_lea.sflag (!%p147_p10), [#allocation3], %s174_s3  ;;  %s476_s20 = scalar_lea.vmem (!%p147_p10), %s637_s6, 256 }
  0x13   : > { %p477_p12 = scmp.ne.s32.totalorder (!%p147_p10), %s637_s6, %s476_s20 }
  0x14   : > { %s179_s23 = scalar_select %p178_p11, %s544_s12, 1  ;;  %vm197_vm0 = vcmask 130048  }
  0x15   : > { %p478_p13 = pnand %p477_p12, %p612_p4  ;;  %s554_s12 = smov [#allocation2]  }
  0x16   : > { %s405_s24 = sshll.u32 %s179_s23, 4  ;;  %s480_s23 = sshll.u32 %s554_s12, 4  ;;  %s481_s23 = int_to_ptr.vmem [resolvable:$false] %s480_s23 }
  0x17   : > { %s191_s27 = scalar_lea.vmem %s690_s1, %s405_s24  ;;  %s185_s30 = scalar_lea.vmem %s689_s0, %s405_s24 }
  0x18   : > { %v196_v0 = vld [vmem:[%s191_s27 + $0x8] sm:$0xff]  ;;  %v195_v1 = vld [vmem:[%s191_s27] sm:$0xff]  ;;  %p479_p0 = pneg %p478_p13  ;;  %s482_s24 = scalar_lea.vmem %s481_s23, 512 }
  0x19   : > { %v193_v2 = vld [vmem:[%s185_s30] sm:$0xff]  ;;  %412 = vmatprep.subr.mxu0 %v196_v0  ;;  %v194_v3 = vld [vmem:[%s185_s30 + $0x8] sm:$0xff]  ;;  %p483_p1 = scmp.lt.s32.totalorder %s637_s6, %s481_s23  ;;  %p484_p2 = scmp.lt.s32.totalorder %s482_s24, %s476_s20 }
  0x1a   : > { %416 = vmatprep.mubr.msk.f32.mxu0 %vm197_vm0, %v193_v2  ;;  %413 = vmatpush3.msra.mxu0 %v196_v0 }
  0x1b   : > { %414 = vmatprep.subr.mxu0 %v195_v1  ;;  %p485_p3 = por %p484_p2, %p483_p1 }
  0x1c   : > { %415 = vmatpush3.msra.mxu0 %v195_v1 }
  0x1d   : > { %417 = vmatmul.mubr.msk.f32.vlgmr.msra.gmra.mxu0 %vm197_vm0, %v194_v3  ;;  %p486_p5 = pnand %p485_p3, %p479_p0 }
  0xdd   : > { %v418_v4 = vpop.f32.mrf.mxu0 }
  0xde   : > { %280 = vst [vmem:[%s176_s5 + $0x8] sm:$0xff] %v418_v4 }
  0xdf   : > { %v270_v5 = vpop.f32.mrf.mxu0 }
  0xe0   : > { %279 = vst [vmem:[%s176_s5] sm:$0xff] %v270_v5 }
  0xe1   : > { %489 = shalt.err (!%p486_p5)
}
  0xe2   : > { %s490_s25 = scalar_lea.hbm %s642_s16, 256  ;;  %s494_s28 = scalar_lea.hbm %s691_s2, 512 }
  0xe3   : > { %p491_p6 = scmp.ne.s32.totalorder %s642_s16, %s490_s25  ;;  %p495_p10 = scmp.lt.s32.totalorder %s642_s16, %s691_s2 }
  0xe4   : > { %p496_p11 = scmp.lt.s32.totalorder %s494_s28, %s490_s25 }
  0xe5   : > { %p492_p7 = pnand %p491_p6, %p612_p4 }
  0xe6   : > { %p497_p12 = por %p496_p11, %p495_p10 }
  0xe7   : > { %p493_p9 = pneg %p492_p7 }
  0xe9   : > { %p498_p13 = pnand %p497_p12, %p493_p9 }
  0xeb   : > { %501 = shalt.err (!%p498_p13)
}
  0xec   : > { %s555_s3 = smov 128   ;;  %s556_s4 = smov 8  }
  0xed   : > { %419 = dma.vmem_to_hbm [thread:$0]  (%p612_p4), %s637_s6, 256, %s642_s16, %s644_s18, %s555_s3, %s555_s3, %s556_s4  }
  0xee PF: > { %p425_p0 = scmp.ge.s32.totalorder %s552_s14, 2  ;;  %s312_s5 = sand.u32 1, %s532_s9  }
  0xef   : > { %s313_s7 = scalar_lea.sflag [#allocation3], %s312_s5 }
  0xf0   : > { %p422_p1 = pnand %p425_p0, %p619_p8 }
  0xf2   : > { %p423_p2 = pneg %p422_p1 }
  0xf4   : > { %527 = dma.done.wait (%p423_p2), %s313_s7, 256  }
  0xf5   : > { %529 = vsyncadd (%p423_p2), %s313_s7, 4294967040  ;;  %s15_s14 = sadd.s32 1, %s552_s14   ;;  %s694_s9 = smov %s536_s10 }
  0xf6   : > { %p12_p3 = scmp.ge.s32.totalorder %s15_s14, 4   ;;  %s695_s10 = smov %s540_s11 }
  0xf7   : > { %s696_s11 = smov %s625_s22  ;;  %s697_s12 = smov %s548_s13 }
  0xf8   : > { %s698_s13 = smov %s700_s17  ;;  %14 = sbr.rel (!%p12_p3) target bundleno = 4 (0x4), region = 66 }
  0xfd   :  { %318 = vsyncpa [#allocation3], 1 }
  0xfe   :  { %320 = vsyncpa [#allocation3 + $0x1], 1 }

</bundles_post_ra>
